<compile_context>
chip_gen: v6e
topology: v6e:2x2x1
jax: 0.10.0
libtpu: 0.0.40
codegen_flags: <defaults>
</compile_context>

<pallas_src>
import functools

import jax
import jax.numpy as jnp
from jax.experimental import pallas as pl
from jax.experimental.pallas import tpu as pltpu


# 32 MiB scoped VMEM: <= physical / default scoped on every generation
# (v5e/v6e/v7x) while still being a raise over v5e's 16 MiB default.
_VMEM_LIMIT = 32 * 1024 * 1024
_EPS = 1e-6


def _tile(dim, target, align):
    """Largest block size <= target that divides `dim` and is a multiple of
    `align`; falls back to the full dimension (always legal for a BlockSpec)."""
    if dim <= target or dim % align != 0:
        return dim
    t = max(align, (target // align) * align)
    while dim % t != 0:
        t -= align
    return t


# ----------------------------------------------------------------------------
# Kernel 1: [optional fused RMSNorm] -> x @ W + b          (QKV / Q / KV proj)
# ----------------------------------------------------------------------------

def _norm_matmul_kernel(x_ref, g_ref, w_ref, b_ref, o_ref, *, eps, apply_norm):
    x = x_ref[...].astype(jnp.float32)                          # (tm, K)
    if apply_norm:
        ms = jnp.mean(x * x, axis=-1, keepdims=True)
        x = x * jax.lax.rsqrt(ms + eps) * g_ref[...].astype(jnp.float32)
    acc = jnp.dot(x.astype(w_ref.dtype), w_ref[...],
                  preferred_element_type=jnp.float32)           # MXU, f32 accum
    o_ref[...] = (acc + b_ref[...].astype(jnp.float32)).astype(o_ref.dtype)


def norm_matmul(x2d, gamma, w, b, *, apply_norm, eps=_EPS,
                tm_target=256, tn_target=256):
    """[RMSNorm(x)] @ w + b.  K (= feature dim) is kept whole so the norm can be
    fused; the grid tiles M (rows) and N (output columns)."""
    n_rows, k = x2d.shape
    d_out = w.shape[1]
    tm = _tile(n_rows, tm_target, 8)
    tn = _tile(d_out, tn_target, 128)
    grid = (n_rows // tm, d_out // tn)
    return pl.pallas_call(
        functools.partial(_norm_matmul_kernel, eps=eps, apply_norm=apply_norm),
        grid=grid,
        in_specs=[
            pl.BlockSpec((tm, k), lambda i, j: (i, 0)),
            pl.BlockSpec((1, k), lambda i, j: (0, 0)),
            pl.BlockSpec((k, tn), lambda i, j: (0, j)),
            pl.BlockSpec((1, tn), lambda i, j: (0, j)),
        ],
        out_specs=pl.BlockSpec((tm, tn), lambda i, j: (i, j)),
        out_shape=jax.ShapeDtypeStruct((n_rows, d_out), x2d.dtype),
        compiler_params=pltpu.CompilerParams(
            dimension_semantics=("parallel", "parallel"),
            vmem_limit_bytes=_VMEM_LIMIT),
    )(x2d, gamma, w, b)


# ----------------------------------------------------------------------------
# Kernel 2: fused RMSNorm -> silu(x@W1 + b1) * (x@W2 + b2)       (SwiGLU FFN in)
# ----------------------------------------------------------------------------

def _norm_swiglu_kernel(x_ref, g_ref, w1_ref, b1_ref, w2_ref, b2_ref, o_ref, *, eps):
    x = x_ref[...].astype(jnp.float32)
    ms = jnp.mean(x * x, axis=-1, keepdims=True)
    xn = (x * jax.lax.rsqrt(ms + eps)
          * g_ref[...].astype(jnp.float32)).astype(w1_ref.dtype)
    a = jnp.dot(xn, w1_ref[...], preferred_element_type=jnp.float32) \
        + b1_ref[...].astype(jnp.float32)
    c = jnp.dot(xn, w2_ref[...], preferred_element_type=jnp.float32) \
        + b2_ref[...].astype(jnp.float32)
    o_ref[...] = (a * jax.nn.sigmoid(a) * c).astype(o_ref.dtype)   # silu(a) * c


def norm_swiglu(x2d, gamma, w1, b1, w2, b2, *, eps=_EPS,
                tm_target=256, tn_target=256):
    n_rows, k = x2d.shape
    d_ff = w1.shape[1]
    tm = _tile(n_rows, tm_target, 8)
    tn = _tile(d_ff, tn_target, 128)
    grid = (n_rows // tm, d_ff // tn)
    return pl.pallas_call(
        functools.partial(_norm_swiglu_kernel, eps=eps),
        grid=grid,
        in_specs=[
            pl.BlockSpec((tm, k), lambda i, j: (i, 0)),
            pl.BlockSpec((1, k), lambda i, j: (0, 0)),
            pl.BlockSpec((k, tn), lambda i, j: (0, j)),
            pl.BlockSpec((1, tn), lambda i, j: (0, j)),
            pl.BlockSpec((k, tn), lambda i, j: (0, j)),
            pl.BlockSpec((1, tn), lambda i, j: (0, j)),
        ],
        out_specs=pl.BlockSpec((tm, tn), lambda i, j: (i, j)),
        out_shape=jax.ShapeDtypeStruct((n_rows, d_ff), x2d.dtype),
        compiler_params=pltpu.CompilerParams(
            dimension_semantics=("parallel", "parallel"),
            vmem_limit_bytes=_VMEM_LIMIT),
    )(x2d, gamma, w1, b1, w2, b2)


# ----------------------------------------------------------------------------
# Kernel 3: K-tiled  h @ W + b + residual  with f32 VMEM accumulator (P1 + P3)
# ----------------------------------------------------------------------------

def _matmul_bias_residual_kernel(h_ref, w_ref, b_ref, r_ref, o_ref, acc_ref):
    @pl.when(pl.program_id(2) == 0)
    def _():
        acc_ref[...] = jnp.zeros_like(acc_ref)

    acc_ref[...] += jnp.dot(h_ref[...], w_ref[...],
                            preferred_element_type=jnp.float32)

    @pl.when(pl.program_id(2) == pl.num_programs(2) - 1)
    def _():
        o_ref[...] = (acc_ref[...]
                      + b_ref[...].astype(jnp.float32)
                      + r_ref[...].astype(jnp.float32)).astype(o_ref.dtype)


def matmul_bias_residual(h2d, w, b, residual2d, *,
                         tm_target=256, tn_target=256, tk_target=512):
    n_rows, k = h2d.shape
    d_out = w.shape[1]
    tm = _tile(n_rows, tm_target, 8)
    tn = _tile(d_out, tn_target, 128)
    tk = _tile(k, tk_target, 128)
    grid = (n_rows // tm, d_out // tn, k // tk)
    return pl.pallas_call(
        _matmul_bias_residual_kernel,
        grid=grid,
        in_specs=[
            pl.BlockSpec((tm, tk), lambda i, j, kk: (i, kk)),
            pl.BlockSpec((tk, tn), lambda i, j, kk: (kk, j)),
            pl.BlockSpec((1, tn), lambda i, j, kk: (0, j)),
            pl.BlockSpec((tm, tn), lambda i, j, kk: (i, j)),
        ],
        out_specs=pl.BlockSpec((tm, tn), lambda i, j, kk: (i, j)),
        out_shape=jax.ShapeDtypeStruct((n_rows, d_out), h2d.dtype),
        scratch_shapes=[pltpu.VMEM((tm, tn), jnp.float32)],
        compiler_params=pltpu.CompilerParams(
            dimension_semantics=("parallel", "parallel", "arbitrary"),
            vmem_limit_bytes=_VMEM_LIMIT),
    )(h2d, w, b, residual2d)


# ----------------------------------------------------------------------------
# Kernel 4: multi-head attention, one batch element per grid step, lane-dense
# (T, D) blocks; head columns are static in-register slices.
# ----------------------------------------------------------------------------

def _attn_kernel(q_ref, k_ref, v_ref, o_ref, *, n_heads, scale):
    q = q_ref[0].astype(jnp.float32) * scale    # (T, D): fold 1/sqrt(dh) into q
    k = k_ref[0].astype(jnp.float32)            # (S, D)
    v = v_ref[0]                                # (S, D), kept in input dtype
    dh = q.shape[-1] // n_heads
    outs = []
    for h in range(n_heads):                    # static head loop
        sl = slice(h * dh, (h + 1) * dh)
        s = jax.lax.dot_general(q[:, sl], k[:, sl], (((1,), (1,)), ((), ())),
                                preferred_element_type=jnp.float32)   # (T, S)
        m = jnp.max(s, axis=-1, keepdims=True)
        p = jnp.exp(s - m)
        p = p * pl.reciprocal(jnp.sum(p, axis=-1, keepdims=True), approx=True)
        outs.append(jnp.dot(p.astype(v.dtype), v[:, sl],
                            preferred_element_type=jnp.float32))      # (T, dh)
    # concatenate heads -> one lane-dense (T, D) store
    o_ref[0] = jnp.concatenate(outs, axis=-1).astype(o_ref.dtype)
    # TODO(synk): add additive/causal mask support (src_mask / tgt_mask);
    # TODO(synk): flash-style online softmax over a KV grid axis for long S
    # (bounds VMEM on v7x's 64 MiB).


def _block_idx_map(col):
    return lambda i: (i, 0, col)


def attention(q_src, kv_src, *, q_idx, k_idx, v_idx, d_model, n_heads):
    """q_src: (B, T, nq*D), kv_src: (B, S, nkv*D).  {q,k,v}_idx select which
    D-wide column block holds Q / K / V, so the fused QKV / KV projection
    outputs feed the kernel directly (no HBM transposes or slice copies)."""
    b, t = q_src.shape[0], q_src.shape[1]
    s = kv_src.shape[1]
    dh = d_model // n_heads
    scale = 1.0 / (dh ** 0.5)
    return pl.pallas_call(
        functools.partial(_attn_kernel, n_heads=n_heads, scale=scale),
        grid=(b,),
        in_specs=[
            pl.BlockSpec((1, t, d_model), _block_idx_map(q_idx)),
            pl.BlockSpec((1, s, d_model), _block_idx_map(k_idx)),
            pl.BlockSpec((1, s, d_model), _block_idx_map(v_idx)),
        ],
        out_specs=pl.BlockSpec((1, t, d_model), lambda i: (i, 0, 0)),
        out_shape=jax.ShapeDtypeStruct((b, t, d_model), q_src.dtype),
        compiler_params=pltpu.CompilerParams(
            dimension_semantics=("parallel",),
            vmem_limit_bytes=_VMEM_LIMIT),
    )(q_src, kv_src, kv_src)


# ----------------------------------------------------------------------------
# Decoder layer forward (matches TransformerDecoderLayer.forward, eval mode)
# ----------------------------------------------------------------------------

def decoder_layer(x, memory, params, n_heads):
    b, t, d = x.shape
    s = memory.shape[1]
    xf = x.reshape(b * t, d)
    mf = memory.reshape(b * s, d)

    # ---- self-attention: x = x + Wo(attn(QKV(norm1(x)))) -------------------
    p = params["self_attn"]
    qkv = norm_matmul(xf, params["norm1"], p["wqkv"], p["bqkv"], apply_norm=True)
    qkv3 = qkv.reshape(b, t, 3 * d)
    attn = attention(qkv3, qkv3, q_idx=0, k_idx=1, v_idx=2,
                     d_model=d, n_heads=n_heads)
    xf = matmul_bias_residual(attn.reshape(b * t, d), p["wo"], p["bo"], xf)

    # ---- cross-attention: x = x + Wo(attn(Q(norm2(x)), KV(memory))) --------
    p = params["cross_attn"]
    q = norm_matmul(xf, params["norm2"], p["wq"], p["bq"], apply_norm=True)
    kv = norm_matmul(mf, params["norm2"], p["wkv"], p["bkv"], apply_norm=False)
    attn = attention(q.reshape(b, t, d), kv.reshape(b, s, 2 * d),
                     q_idx=0, k_idx=0, v_idx=1, d_model=d, n_heads=n_heads)
    xf = matmul_bias_residual(attn.reshape(b * t, d), p["wo"], p["bo"], xf)

    # ---- feed-forward: x = x + W3(silu(W1 h + b1) * (W2 h + b2)), h=norm3(x)
    p = params["ffn"]
    hidden = norm_swiglu(xf, params["norm3"],
                         p["w1"], p["b1"], p["w2"], p["b2"])
    xf = matmul_bias_residual(hidden, p["w3"], p["b3"], xf)

    return xf.reshape(b, t, d)


# ----------------------------------------------------------------------------
# Deterministic parameter init (weights bf16, biases / norm weights f32)
# ----------------------------------------------------------------------------

def _init_linear(key, din, dout, dtype):
    kw, kb = jax.random.split(key)
    w = (jax.random.normal(kw, (din, dout), jnp.float32) * 0.02).astype(dtype)
    b = jax.random.normal(kb, (1, dout), jnp.float32) * 0.02
    return w, b


def init_params(key, d_model, d_ff, dtype=jnp.bfloat16):
    ks = jax.random.split(key, 8)
    wqkv, bqkv = _init_linear(ks[0], d_model, 3 * d_model, dtype)
    wso, bso = _init_linear(ks[1], d_model, d_model, dtype)
    wq, bq = _init_linear(ks[2], d_model, d_model, dtype)
    wkv, bkv = _init_linear(ks[3], d_model, 2 * d_model, dtype)
    wco, bco = _init_linear(ks[4], d_model, d_model, dtype)
    w1, b1 = _init_linear(ks[5], d_model, d_ff, dtype)
    w2, b2 = _init_linear(ks[6], d_model, d_ff, dtype)
    w3, b3 = _init_linear(ks[7], d_ff, d_model, dtype)
    ones = jnp.ones((1, d_model), jnp.float32)
    return {
        "self_attn": {"wqkv": wqkv, "bqkv": bqkv, "wo": wso, "bo": bso},
        "cross_attn": {"wq": wq, "bq": bq, "wkv": wkv, "bkv": bkv,
                       "wo": wco, "bo": bco},
        "ffn": {"w1": w1, "b1": b1, "w2": w2, "b2": b2, "w3": w3, "b3": b3},
        "norm1": ones, "norm2": ones, "norm3": ones,
    }


# ----------------------------------------------------------------------------
# Pure-JAX f32 reference (for a loose numerical sanity check)
# ----------------------------------------------------------------------------

def _ref_rmsnorm(x, g, eps=_EPS):
    x = x.astype(jnp.float32)
    return x * jax.lax.rsqrt(jnp.mean(x * x, axis=-1, keepdims=True) + eps) * g


def _ref_attention(q, k, v, n_heads):
    b, t, d = q.shape
    s = k.shape[1]
    dh = d // n_heads
    qh = q.reshape(b, t, n_heads, dh).transpose(0, 2, 1, 3)
    kh = k.reshape(b, s, n_heads, dh).transpose(0, 2, 1, 3)
    vh = v.reshape(b, s, n_heads, dh).transpose(0, 2, 1, 3)
    sc = jnp.einsum("bhtd,bhsd->bhts", qh, kh) * (1.0 / (dh ** 0.5))
    p = jax.nn.softmax(sc, axis=-1)
    o = jnp.einsum("bhts,bhsd->bhtd", p, vh)
    return o.transpose(0, 2, 1, 3).reshape(b, t, d)


def reference_decoder_layer(x, memory, params, n_heads):
    pf = jax.tree_util.tree_map(lambda a: a.astype(jnp.float32), params)
    x = x.astype(jnp.float32)
    memory = memory.astype(jnp.float32)

    p = pf["self_attn"]
    h = _ref_rmsnorm(x, pf["norm1"])
    qkv = h @ p["wqkv"] + p["bqkv"]
    q, k, v = jnp.split(qkv, 3, axis=-1)
    x = _ref_attention(q, k, v, n_heads) @ p["wo"] + p["bo"] + x

    p = pf["cross_attn"]
    h = _ref_rmsnorm(x, pf["norm2"])
    q = h @ p["wq"] + p["bq"]
    kv = memory @ p["wkv"] + p["bkv"]
    k, v = jnp.split(kv, 2, axis=-1)
    x = _ref_attention(q, k, v, n_heads) @ p["wo"] + p["bo"] + x

    p = pf["ffn"]
    h = _ref_rmsnorm(x, pf["norm3"])
    a = h @ p["w1"] + p["b1"]
    c = h @ p["w2"] + p["b2"]
    x = (jax.nn.silu(a) * c) @ p["w3"] + p["b3"] + x
    return x


# ----------------------------------------------------------------------------

if __name__ == "__main__":
    d_model = 128
    n_heads = 4            # head dim 32
    d_ff = 4 * d_model     # 512
    batch, tgt_len, src_len = 2, 8, 8

    key = jax.random.PRNGKey(0)
    k_params, k_x, k_mem = jax.random.split(key, 3)
    params = init_params(k_params, d_model, d_ff, dtype=jnp.bfloat16)

    x = jax.random.normal(k_x, (batch, tgt_len, d_model),
                          jnp.float32).astype(jnp.bfloat16)
    memory = jax.random.normal(k_mem, (batch, src_len, d_model),
                               jnp.float32).astype(jnp.bfloat16)

    out = decoder_layer(x, memory, params, n_heads)
    out = jax.block_until_ready(out)
    assert out.shape == (batch, tgt_len, d_model)
    assert bool(jnp.all(jnp.isfinite(out.astype(jnp.float32))))

    # loose numerical sanity check vs the pure-JAX f32 reference
    # (bf16 kernel path + approximate-reciprocal softmax).
    ref = reference_decoder_layer(x, memory, params, n_heads)
    max_diff = float(jnp.max(jnp.abs(out.astype(jnp.float32) - ref)))
    assert max_diff < 0.15, f"max_diff={max_diff}"

    print("KERNEL_OK")
</pallas_src>

<mosaic_0001>
module attributes {stable_mosaic.version = 11 : i64} {
  func.func @_norm_matmul_kernel(%arg0: i32, %arg1: i32, %arg2: memref<16x128xbf16, #tpu.memory_space<vmem>>, %arg3: memref<1x128xf32, #tpu.memory_space<vmem>>, %arg4: memref<128x128xbf16, #tpu.memory_space<vmem>>, %arg5: memref<1x128xf32, #tpu.memory_space<vmem>>, %arg6: memref<16x128xbf16, #tpu.memory_space<vmem>>) attributes {dimension_semantics = [#tpu.dimension_semantics<parallel>, #tpu.dimension_semantics<parallel>], iteration_bounds = array<i64: 1, 3>, scalar_prefetch = 0 : i64, scratch_operands = 0 : i64, tpu.core_type = #tpu.core_type<tc>, window_params = [{transform_indices = @transform_0, window_bounds = array<i64: 16, 128>}, {pipeline_mode = #tpu.pipeline_mode<synchronous>, transform_indices = @transform_1, window_bounds = array<i64: 1, 128>}, {transform_indices = @transform_2, window_bounds = array<i64: 128, 128>}, {transform_indices = @transform_3, window_bounds = array<i64: 1, 128>}, {transform_indices = @transform_4, window_bounds = array<i64: 16, 128>}]} {
    %c0 = arith.constant 0 : index
    %c0_0 = arith.constant 0 : index
    %0 = vector.load %arg2[%c0, %c0_0] : memref<16x128xbf16, #tpu.memory_space<vmem>>, vector<16x128xbf16>
    %1 = arith.extf %0 : vector<16x128xbf16> to vector<16x128xf32>
    %2 = arith.mulf %1, %1 : vector<16x128xf32>
    %cst = arith.constant dense<0.000000e+00> : vector<16xf32>
    %3 = vector.multi_reduction <add>, %2, %cst [1] : vector<16x128xf32> to vector<16xf32>
    %4 = vector.shape_cast %3 : vector<16xf32> to vector<16x1xf32>
    %cst_1 = arith.constant 1.280000e+02 : f32
    %5 = vector.broadcast %cst_1 : f32 to vector<16x1xf32>
    %6 = arith.divf %4, %5 : vector<16x1xf32>
    %cst_2 = arith.constant 9.99999997E-7 : f32
    %7 = vector.broadcast %cst_2 : f32 to vector<16x1xf32>
    %8 = arith.addf %6, %7 : vector<16x1xf32>
    %9 = math.rsqrt %8 : vector<16x1xf32>
    %10 = vector.broadcast %9 : vector<16x1xf32> to vector<16x128xf32>
    %11 = arith.mulf %1, %10 : vector<16x128xf32>
    %c0_3 = arith.constant 0 : index
    %c0_4 = arith.constant 0 : index
    %12 = vector.load %arg3[%c0_3, %c0_4] : memref<1x128xf32, #tpu.memory_space<vmem>>, vector<1x128xf32>
    %13 = vector.broadcast %12 : vector<1x128xf32> to vector<16x128xf32>
    %14 = arith.mulf %11, %13 : vector<16x128xf32>
    %15 = arith.truncf %14 : vector<16x128xf32> to vector<16x128xbf16>
    %c0_5 = arith.constant 0 : index
    %c0_6 = arith.constant 0 : index
    %16 = vector.load %arg4[%c0_5, %c0_6] : memref<128x128xbf16, #tpu.memory_space<vmem>>, vector<128x128xbf16>
    %cst_7 = arith.constant dense<0.000000e+00> : vector<16x128xf32>
    %17 = tpu.matmul %15, %16, %cst_7 {dimension_numbers = #tpu.dot_dimension_numbers<[1], [0], [0], [1], [0, 0, 1, 1], [], []>} : vector<16x128xbf16>, vector<128x128xbf16>, vector<16x128xf32> -> vector<16x128xf32>
    %c0_8 = arith.constant 0 : index
    %c0_9 = arith.constant 0 : index
    %18 = vector.load %arg5[%c0_8, %c0_9] : memref<1x128xf32, #tpu.memory_space<vmem>>, vector<1x128xf32>
    %19 = vector.broadcast %18 : vector<1x128xf32> to vector<16x128xf32>
    %20 = arith.addf %17, %19 : vector<16x128xf32>
    %21 = arith.truncf %20 : vector<16x128xf32> to vector<16x128xbf16>
    %c0_10 = arith.constant 0 : index
    %c0_11 = arith.constant 0 : index
    %22 = vector.load %arg6[%c0_10, %c0_11] : memref<16x128xbf16, #tpu.memory_space<vmem>>, vector<16x128xbf16>
    tpu.vector_store %arg6[%c0_10, %c0_11], %21 {strides = array<i32>} : memref<16x128xbf16, #tpu.memory_space<vmem>>, vector<16x128xbf16>,
    return
  }
  func.func @transform_0(%arg0: i32, %arg1: i32) -> (i32, i32) {
    %c0_i32 = arith.constant 0 : i32
    %c0_i32_0 = arith.constant 0 : i32
    return %arg0, %c0_i32 : i32, i32
  }
  func.func @transform_1(%arg0: i32, %arg1: i32) -> (i32, i32) {
    %c0_i32 = arith.constant 0 : i32
    %c0_i32_0 = arith.constant 0 : i32
    %c0_i32_1 = arith.constant 0 : i32
    return %c0_i32, %c0_i32_0 : i32, i32
  }
  func.func @transform_2(%arg0: i32, %arg1: i32) -> (i32, i32) {
    %c0_i32 = arith.constant 0 : i32
    %c0_i32_0 = arith.constant 0 : i32
    return %c0_i32, %arg1 : i32, i32
  }
  func.func @transform_3(%arg0: i32, %arg1: i32) -> (i32, i32) {
    %c0_i32 = arith.constant 0 : i32
    %c0_i32_0 = arith.constant 0 : i32
    return %c0_i32, %arg1 : i32, i32
  }
  func.func @transform_4(%arg0: i32, %arg1: i32) -> (i32, i32) {
    %c0_i32 = arith.constant 0 : i32
    return %arg0, %arg1 : i32, i32
  }
}

</mosaic_0001>

<bundles_post_ra>
// kernel: tpu_custom_call.1
= control target key start
LH: loop header
LB: loop body
LE: loop exit
PB: predicated region body
PF: predicated region fallthrough
CT: control target
= control target key end

     0   :  { %9 = vsyncpa [#allocation3], 0  ;;  %s1075_s0 = inlined_call_operand.hbm [shape: bf16[16,128], index: 0, kind: input, shape index: {}]   ;;  %s1076_s1 = inlined_call_operand.vmem [shape: f32[1,128], index: 1, kind: input, shape index: {}]   ;;  %s1077_s2 = inlined_call_operand.hbm [shape: bf16[128,384], index: 2, kind: input, shape index: {}]   ;;  %s1078_s3 = inlined_call_operand.vmem [shape: f32[1,384], index: 3, kind: input, shape index: {}]   ;;  %s1079_s4 = inlined_call_operand.hbm [shape: bf16[16,384], index: 4, kind: output, shape index: {}]  }
   0x1   :  { %10 = vsyncpa [#allocation6], 0 }
   0x2   :  { %12 = vsyncpa [#allocation6 + $0x1], 0 }
   0x3   :  { %13 = vsyncpa [#allocation4], 0 }
   0x4   :  { %15 = vsyncpa [#allocation4 + $0x1], 0  ;;  %s878_s15 = smov 0   ;;  %s880_s16 = smov 0  }
   0x5   :  { %s882_s17 = smov 0   ;;  %s884_s18 = smov 0  }
   0x6   :  { %s886_s19 = smov 0   ;;  %s888_s20 = smov 0  }
   0x7 LB: > { %1087 = sst [smem:[#allocation11_spill]] %s820_s15  ;;  %s542_s21 = sadd.s32 4294967295, %s840_s20   ;;  %s840_s20 = sphi %s888_s20, %s1110_s20   ;;  %s836_s19 = sphi %s886_s19, %s1109_s19   ;;  %s832_s18 = sphi %s884_s18, %s1108_s18   ;;  %s828_s17 = sphi %s882_s17, %s1107_s17   ;;  %s824_s16 = sphi %s880_s16, %s1106_s16   ;;  %s820_s15 = sphi %s878_s15, %s1105_s15  }
   0x8   : > { %1088 = sst [smem:[#allocation12_spill]] %s840_s20  ;;  %s543_s22 = sadd.s32 4294967294, %s840_s20  }
   0x9   : > { %p94_p0 = scmp.ne.s32.totalorder %s828_s17, %s824_s16  ;;  %p95_p1 = scmp.eq.s32.totalorder %s840_s20, 0 }
   0xa   : > { %p100_p2 = scmp.ne.s32.totalorder %s824_s16, %s820_s15  ;;  %p915_p3 = scmp.eq.s32.totalorder %s542_s21, 0 }
   0xb   : > { %p919_p4 = por %p95_p1, %p94_p0  ;;  %p152_p5 = scmp.eq.s32.totalorder %s542_s21, 2 }
   0xc   : > { %p925_p6 = por %p915_p3, %p100_p2  ;;  %p158_p7 = scmp.eq.s32.totalorder %s543_s22, 2 }
   0xd   : > { %p929_p8 = por %p152_p5, %p94_p0  ;;  %p544_p9 = scmp.ge.s32.totalorder %s840_s20, 1 }
   0xe   : > { %s1091_s25 = scalar_select %p925_p6, 1, 0 }
   0xf   : > { %s1092_s26 = scalar_select %p929_p8, 1, 0 }
  0x10   : > { %p934_p10 = por %p158_p7, %p100_p2  ;;  %p165_p11 = scmp.lt.s32.totalorder %s840_s20, 4 }
  0x11   : > { %s842_s29 = smov [#allocation2]   ;;  %p630_p0 = scmp.lt.s32.totalorder %s840_s20, 3 }
  0x12   : > { %s1093_s27 = scalar_select %p934_p10, 1, 0 }
  0x13   : > { %p939_p12 = pnand %p544_p9, %p165_p11  ;;  %s180_s30 = sshll.u32 %s842_s29, 4  ;;  %s181_s30 = int_to_ptr.vmem [resolvable:$true] %s180_s30 }
  0x14   : > { %1094 = sst [smem:[#allocation13_spill]] %s1093_s27  ;;  %p954_p2 = pnand %p630_p0, %p919_p4 }
  0x15   : > { %p617_p13 = pneg %p939_p12  ;;  %s30_s7 = sadd.s32 1, %s836_s19 }
  0x16   : > { %s713_s8 = scalar_lea.vmem %s181_s30, 128  ;;  %p721_p10 = scmp.lt.s32.totalorder %s181_s30, %s181_s30 }
  0x17   : > { %p948_p1 = pnand %p617_p13, %p915_p3  ;;  %p714_p7 = scmp.ne.s32.totalorder %s181_s30, %s713_s8 }
  0x18   : > { %p722_p8 = scmp.lt.s32.totalorder %s713_s8, %s713_s8 }
  0x19   : > { %p704_p5 = pneg %p948_p1 }
  0x1a   : > { %p723_p6 = por %p722_p8, %p721_p10 }
  0x1b   : > { %p716_p9 = pnand %p714_p7, %p704_p5 }
  0x1d   : > { %p717_p11 = pneg %p716_p9 }
  0x1f   : > { %p724_p13 = pnand %p723_p6, %p717_p11 }
  0x21   : > { %727 = shalt.err (!%p724_p13)
}
  0x22   : > { %s1086_s9 = smov 64   ;;  %s844_s10 = smov 4  }
  0x23   : > { %620 = dma.hbm_to_vmem [thread:$0]  (!%p948_p1), %s1075_s0, 128, %s181_s30, [#allocation3], %s1086_s9, %s1086_s9, %s844_s10  }
  0x24   : > { %p31_p4 = scmp.ge.s32.totalorder %s30_s7, 3  ;;  %s87_s13 = sadd.s32 1, %s828_s17 }
  0x25   : > { %s197_s14 = sand.u32 1, %s828_s17   ;;  %s548_s24 = sshll.u32 %s836_s19, 6 }
  0x26   : > { %s1112_s7 = smov (%p31_p4, %s30_s7), 0  ;;  %s547_s21 = sshll.u32 %s197_s14, 6 }
  0x27   : > { %s84_s22 = ssub.s32 %s836_s19, %s1112_s7  ;;  %s206_s8 = scalar_lea.hbm %s1077_s2, %s548_s24 }
  0x28   : > { %p85_p6 = scmp.eq.s32.totalorder %s84_s22, 0  ;;  %s201_s27 = scalar_lea.vmem [#allocation5], %s547_s21 }
  0x29   : > { %s207_s15 = sshll.u32 %s201_s27, 4  ;;  %s198_s30 = scalar_lea.sflag [#allocation6], %s197_s14  ;;  %s208_s15 = int_to_ptr.vmem [resolvable:$true] %s207_s15 }
  0x2a   : > { %s980_s20 = scalar_select %p85_p6, %s828_s17, %s87_s13  }
  0x2b   : > { %p730_p8 = pneg %p954_p2  ;;  %s741_s11 = scalar_lea.vmem %s208_s15, 1024 }
  0x2c   : > { %p742_p10 = scmp.ne.s32.totalorder %s208_s15, %s741_s11  ;;  %s845_s12 = smov [#allocation5]  }
  0x2d   : > { %s746_s9 = sshll.u32 %s845_s12, 4  ;;  %s747_s9 = int_to_ptr.vmem [resolvable:$false] %s746_s9 }
  0x2e   : > { %p744_p0 = pnand %p742_p10, %p730_p8  ;;  %s748_s22 = scalar_lea.vmem %s747_s9, 2048 }
  0x2f   : > { %p749_p5 = scmp.lt.s32.totalorder %s208_s15, %s747_s9  ;;  %p750_p7 = scmp.lt.s32.totalorder %s748_s22, %s741_s11 }
  0x30   : > { %p745_p1 = pneg %p744_p0 }
  0x31   : > { %p751_p9 = por %p750_p7, %p749_p5 }
  0x33   : > { %p752_p11 = pnand %p751_p9, %p745_p1 }
  0x35   : > { %755 = shalt.err (!%p752_p11)
}
  0x36   : > { %s846_s27 = smov 192   ;;  %s1098_s13 = smov 64  }
  0x37   : > { %624 = dma.hbm_to_vmem [thread:$0]  (!%p954_p2), %s206_s8, 1024, %s208_s15, %s198_s30, %s846_s27, %s1098_s13, %s844_s10  }
  0x38   : > { %225 = sbr.rel (%p939_p12) target bundleno = 453 (0x1c5), region = 36 }
  0x3d   : > { %807 = dma.done.wait (%p915_p3), [#allocation3], 128  }
  0x3e   : > { %809 = vsyncadd (%p915_p3), [#allocation3], 4294967168  ;;  %s995_s9 = sand.u32 1, %s824_s16   ;;  %p1099_p2 = scmp.ne.s32.totalorder %s1091_s25, 0 }
  0x3f   : > { %s551_s14 = sshll.u32 %s995_s9, 6  ;;  %s232_s6 = scalar_lea.sflag [#allocation6], %s995_s9 }
  0x40   : > { %s999_s21 = scalar_lea.vmem [#allocation5], %s551_s14 }
  0x41   : > { %811 = dma.done.wait (%p1099_p2), %s232_s6, 1024  }
  0x42   : > { %813 = vsyncadd (%p1099_p2), %s232_s6, 4294966272  ;;  %v847_v0 = vmov 0.0   ;;  %v572_v1 = vld [vmem:[#allocation2] sm:$0xff]   ;;  %v691_v7 = vld [vmem:[%s999_s21 + $0x30] sm:$0xff]   ;;  %vm848_vm0 = vmmov 0   ;;  %p264_p3 = scmp.lt.s32.totalorder %s832_s18, 2 }
  0x43   : > { %589 = vmatprep.subr.bf16.mxu0 %v847_v0  ;;  %v573_v2 = vunpack.c.l.bf16 %v572_v1  ;;  %v574_v3 = vunpack.c.h.bf16 %v572_v1  ;;  %v690_v4 = vld [vmem:[%s999_s21 + $0x38] sm:$0xff]   ;;  %v692_v8 = vld [vmem:[%s999_s21 + $0x28] sm:$0xff]   ;;  %v693_v9 = vld [vmem:[%s999_s21 + $0x20] sm:$0xff]   ;;  %605 = vmatprep.mubr.msk.bf16.mxu0 %vm848_vm0, %v847_v0  ;;  %s552_s28 = sshll.u32 %s995_s9, 3  ;;  %s566_s30 = sshll.u32 %s832_s18, 6 }
  0x44   : > { %590 = vmatpush3.bf16.msra.mxu0 %v690_v4  ;;  %v694_v10 = vld [vmem:[%s999_s21 + $0x18] sm:$0xff]   ;;  %v695_v11 = vld [vmem:[%s999_s21 + $0x10] sm:$0xff]   ;;  %v696_v12 = vld [vmem:[%s999_s21 + $0x8] sm:$0xff]   ;;  %s265_s25 = scalar_select %p264_p3, %s832_s18, 2 }
  0x45   : > { %v273_v5 = vmul.f32 %v573_v2, %v573_v2  ;;  %591 = vmatprep.subr.bf16.mxu0 %v847_v0  ;;  %v274_v6 = vmul.f32 %v574_v3, %v574_v3  ;;  %v697_v13 = vld [vmem:[%s999_s21] sm:$0xff]   ;;  %v553_v23 = vld [vmem:[%s1076_s1] ss:$0 sm:$0xff]  ;;  %s262_s5 = scalar_lea.vmem [#allocation7], %s552_s28  ;;  %s1028_s22 = scalar_lea.hbm %s1079_s4, %s566_s30 }
  0x46   : > { %s266_s29 = scalar_lea.vmem %s1078_s3, %s265_s25  ;;  %s436_s8 = sshll.u32 %s262_s5, 4  ;;  %s1023_s8 = int_to_ptr.vmem [resolvable:$true] %s436_s8 }
  0x47   : > { %275 = vadd.xlane.f32.xlu0 %v273_v5  ;;  %v554_v29 = vld [vmem:[%s266_s29] ss:$0 sm:$0xff]  ;;  %s421_s27 = scalar_lea.sflag [#allocation4], %s995_s9  ;;  %s756_s13 = scalar_lea.vmem %s1023_s8, 128 }
  0x48   : > { %592 = vmatpush3.bf16.msra.mxu0 %v691_v7  ;;  %p757_p12 = scmp.ne.s32.totalorder %s1023_s8, %s756_s13  ;;  %p1100_p13 = scmp.ne.s32.totalorder %s1092_s26, 0 }
  0x49   : > { %593 = vmatprep.subr.bf16.mxu0 %v847_v0  ;;  %s849_s18 = smov [#allocation7]  }
  0x4a   : > { %p758_p4 = pnand %p757_p12, %p1100_p13  ;;  %s760_s14 = sshll.u32 %s849_s18, 4  ;;  %s761_s14 = int_to_ptr.vmem [resolvable:$false] %s760_s14 }
  0x4b   : > { %277 = vadd.xlane.f32.xlu0 %v274_v6  ;;  %s762_s6 = scalar_lea.vmem %s761_s14, 256  ;;  %p763_p8 = scmp.lt.s32.totalorder %s1023_s8, %s761_s14 }
  0x4c   : > { %594 = vmatpush3.bf16.msra.mxu0 %v692_v8  ;;  %p759_p6 = pneg %p758_p4  ;;  %p764_p10 = scmp.lt.s32.totalorder %s762_s6, %s756_s13 }
  0x4d   : > { %595 = vmatprep.subr.bf16.mxu0 %v847_v0 }
  0x4e   : > { %p765_p0 = por %p764_p10, %p763_p8 }
  0x50   : > { %596 = vmatpush3.bf16.msra.mxu0 %v693_v9  ;;  %p766_p1 = pnand %p765_p0, %p759_p6 }
  0x51   : > { %597 = vmatprep.subr.bf16.mxu0 %v847_v0 }
  0x54   : > { %598 = vmatpush3.bf16.msra.mxu0 %v694_v10 }
  0x55   : > { %599 = vmatprep.subr.bf16.mxu0 %v847_v0 }
  0x58   : > { %600 = vmatpush3.bf16.msra.mxu0 %v695_v11 }
  0x59   : > { %601 = vmatprep.subr.bf16.mxu0 %v847_v0 }
  0x5c   : > { %602 = vmatpush3.bf16.msra.mxu0 %v696_v12 }
  0x5d   : > { %603 = vmatprep.subr.bf16.mxu0 %v847_v0 }
  0x60   : > { %604 = vmatpush3.bf16.msra.mxu0 %v697_v13 }
  0xd0   : > { %v276_v14 = vpop.xlane.xlu0 %275 }
  0xd1   : > { %v280_v15 = vmul.f32 0.0078125, %v276_v14 }
  0xd3   : > { %v282_v16 = vadd.f32 1e-06, %v280_v15 }
  0xd4   : > { %v278_v17 = vpop.xlane.xlu0 %277 }
  0xd5   : > { %698 = vrsqrt.f32 %v282_v16  ;;  %v281_v18 = vmul.f32 0.0078125, %v278_v17 }
  0xd7   : > { %v283_v19 = vadd.f32 1e-06, %v281_v18 }
  0xd9   : > { %700 = vrsqrt.f32 %v283_v19 }
  0xe2   : > { %v699_v20 = vpop.eup %698 }
  0xe3   : > { %v286_v21 = vmul.f32 %v699_v20, %v573_v2 }
  0xe5   : > { %v295_v25 = vmul.f32 %v553_v23, %v286_v21 }
  0xe6   : > { %v701_v22 = vpop.eup %700 }
  0xe7   : > { %v287_v24 = vmul.f32 %v701_v22, %v574_v3 }
  0xe9   : > { %v296_v26 = vmul.f32 %v553_v23, %v287_v24 }
  0xeb   : > { %v297_v27 = vpack.c.bf16 %v296_v26, %v295_v25 }
  0xed   : > { %606 = vmatmul.mubr.bf16.vlgmr.msra.gmra.mxu0 %v297_v27 }
 0x1ad   : > { %v403_v28 = vpop.f32.mrf.mxu0 }
 0x1ae   : > { %v404_v32 = vadd.f32 %v554_v29, %v403_v28 }
 0x1af   : > { %v607_v30 = vpop.f32.mrf.mxu0 }
 0x1b1   : > { %v406_v31 = vpop.f32.mrf.mxu0 }
 0x1b2   : > { %v407_v33 = vadd.f32 %v554_v29, %v406_v31 }
 0x1b3   : > { %v608_v34 = vpop.f32.mrf.mxu0 }
 0x1b4   : > { %v578_v35 = vpack.c.bf16 %v407_v33, %v404_v32 }
 0x1b6   : > { %579 = vst [vmem:[%s262_s5] sm:$0xff] %v578_v35  }
 0x1b7   : > { %769 = shalt.err (!%p766_p1)
}
 0x1b8   : > { %s770_s21 = scalar_lea.hbm %s1028_s22, 128  ;;  %s774_s25 = scalar_lea.hbm %s1079_s4, 384 }
 0x1b9   : > { %p771_p5 = scmp.ne.s32.totalorder %s1028_s22, %s770_s21  ;;  %p775_p11 = scmp.lt.s32.totalorder %s1028_s22, %s1079_s4 }
 0x1ba   : > { %p776_p2 = scmp.lt.s32.totalorder %s774_s25, %s770_s21 }
 0x1bb   : > { %p772_p7 = pnand %p771_p5, %p1100_p13 }
 0x1bc   : > { %p777_p3 = por %p776_p2, %p775_p11 }
 0x1bd   : > { %p773_p9 = pneg %p772_p7 }
 0x1bf   : > { %p778_p12 = pnand %p777_p3, %p773_p9 }
 0x1c1   : > { %781 = shalt.err (!%p778_p12)
}
 0x1c2   : > { %s850_s24 = smov 64   ;;  %s851_s29 = smov 192  }
 0x1c3   : > { %s852_s5 = smov 4  }
 0x1c4   : > { %615 = dma.vmem_to_hbm [thread:$0]  (%p1100_p13), %s1023_s8, 128, %s1028_s22, %s421_s27, %s850_s24, %s851_s29, %s852_s5  }
 0x1c5 PF: > { %s1101_s30 = sld [smem:[#allocation12_spill]] }
 0x1c6   : > { %s1102_s11 = sld [smem:[#allocation11_spill]] }
 0x1c7   : > { %s1103_s12 = sld [smem:[#allocation13_spill]] }
 0x1cb   : > { %p632_p4 = scmp.ge.s32.totalorder %s1101_s30, 2 }
 0x1cc   : > { %s451_s13 = sand.u32 1, %s1102_s11  }
 0x1cd   : > { %p1104_p6 = scmp.ne.s32.totalorder %s1103_s12, 0  ;;  %s452_s18 = scalar_lea.sflag [#allocation4], %s451_s13 }
 0x1cf   : > { %p626_p8 = pnand %p632_p4, %p1104_p6 }
 0x1d1   : > { %p627_p10 = pneg %p626_p8 }
 0x1d3   : > { %815 = dma.done.wait (%p627_p10), %s452_s18, 128  }
 0x1d4   : > { %817 = vsyncadd (%p627_p10), %s452_s18, 4294967168  ;;  %s21_s14 = sadd.s32 1, %s1101_s30   ;;  %s1105_s15 = smov %s824_s16 }
 0x1d5   : > { %p18_p0 = scmp.ge.s32.totalorder %s21_s14, 5   ;;  %s1106_s16 = smov %s828_s17 }
 0x1d6   : > { %s1107_s17 = smov %s980_s20  ;;  %s1108_s18 = smov %s836_s19 }
 0x1d7   : > { %s1109_s19 = smov %s1112_s7  ;;  %s1110_s20 = smov %s21_s14 }
 0x1d8   :  { %20 = sbr.rel (!%p18_p0) target bundleno = 7 (0x7), region = 90 }
 0x1dd   :  { %457 = vsyncpa [#allocation3], 1 }
 0x1de   :  { %459 = vsyncpa [#allocation3 + $0x1], 1 }
 0x1df   :  { %460 = vsyncpa [#allocation6], 1 }
 0x1e0   :  { %462 = vsyncpa [#allocation6 + $0x1], 1 }
 0x1e1   :  { %463 = vsyncpa [#allocation4], 1 }
 0x1e2   :  { %465 = vsyncpa [#allocation4 + $0x1], 1 }

</bundles_post_ra>
